<compile_context>
chip_gen: v5e
topology: v5e:2x2
jax: 0.10.0
libtpu: 0.0.40
codegen_flags: <defaults>
</compile_context>

<pallas_src>
import functools
import math

import jax
import jax.numpy as jnp
from jax.experimental import pallas as pl
from jax.experimental.pallas import tpu as pltpu


def _cbam_channel_gate_kernel(x_ref, w1t_ref, b1_ref, w2t_ref, b2_ref, o_ref,
                              *, hw_true):
    x = x_ref[...]                                   # (B, C, HWp)
    bsz = x.shape[0]
    hw_pad = x.shape[-1]
    xf = x.astype(jnp.float32)

    # Spatial pooling over the lane-dense H*W axis (per batch row / channel).
    if hw_pad == hw_true:
        s = jnp.sum(xf, axis=-1)                     # (B, C)
        mx = jnp.max(xf, axis=-1)                    # (B, C)
    else:
        # Padded lanes must not contribute to the pools.
        lane = jax.lax.broadcasted_iota(jnp.int32, xf.shape, 2)
        valid = lane < hw_true
        s = jnp.sum(jnp.where(valid, xf, 0.0), axis=-1)
        mx = jnp.max(jnp.where(valid, xf, -jnp.inf), axis=-1)
    avg = s * (1.0 / float(hw_true))                 # (B, C)

    # Fused shared-MLP: one matmul for both pooling branches.
    pooled = jnp.concatenate([avg, mx], axis=0)      # (2B, C)
    h = jnp.maximum(
        jnp.dot(pooled, w1t_ref[...], preferred_element_type=jnp.float32)
        + b1_ref[...], 0.0)                          # (2B, hid)
    hsum = h[:bsz] + h[bsz:]                         # (B, hid)
    att = (jnp.dot(hsum, w2t_ref[...], preferred_element_type=jnp.float32)
           + 2.0 * b2_ref[...])                      # (B, C)  (b2 folded once)
    scale = jax.nn.sigmoid(att)                      # (B, C)

    # Per-(batch, channel) gate broadcast along the spatial lanes.
    o_ref[...] = (xf * scale[:, :, None]).astype(o_ref.dtype)


def _choose_batch_tile(n, per_batch_bytes, target_bytes):
    """Multi-MiB tiles, but keep >=2 grid steps (ideally >=4) for dual-TC chips."""
    bt = max(1, min(n, target_bytes // max(per_batch_bytes, 1)))
    if n >= 4:
        bt = min(bt, max(1, n // 4))
    elif n >= 2:
        bt = min(bt, max(1, n // 2))
    return int(bt)


def cbam_channel_gate_forward(x_nchw, params, *, target_tile_bytes=4 << 20):
    """Fused CBAM ChannelGate forward. x_nchw: (N, C, H, W)."""
    N, C, H, W = x_nchw.shape
    hid = params["w1"].shape[0]
    HW = H * W
    dtype_bytes = jnp.dtype(x_nchw.dtype).itemsize

    # Free reshape (no transpose): channels on sublanes, H*W on lanes.
    x_rows = x_nchw.reshape(N, C, HW)

    # Keep the last block dim a multiple of 128 (full-width stores).
    HWp = ((HW + 127) // 128) * 128
    if HWp != HW:
        x_rows = jnp.pad(x_rows, ((0, 0), (0, 0), (0, HWp - HW)))

    per_batch_bytes = C * HWp * dtype_bytes
    b_tile = _choose_batch_tile(N, per_batch_bytes, target_tile_bytes)
    tile_bytes = b_tile * per_batch_bytes
    # 2x input + 2x output double buffers + weights + slack; cap for v7x (64 MiB).
    vmem_limit = int(min(max(4 * tile_bytes + (2 << 20), 32 << 20), 48 << 20))

    w1t = params["w1"].reshape(hid, C).T.astype(jnp.float32)   # (C, hid)
    b1 = params["b1"].reshape(1, hid).astype(jnp.float32)
    w2t = params["w2"].reshape(C, hid).T.astype(jnp.float32)   # (hid, C)
    b2 = params["b2"].reshape(1, C).astype(jnp.float32)

    full = lambda n: (0, 0)
    kernel = functools.partial(_cbam_channel_gate_kernel, hw_true=HW)

    out_rows = pl.pallas_call(
        kernel,
        out_shape=jax.ShapeDtypeStruct((N, C, HWp), x_nchw.dtype),
        grid_spec=pltpu.PrefetchScalarGridSpec(
            num_scalar_prefetch=0,
            grid=(pl.cdiv(N, b_tile),),
            in_specs=[
                pl.BlockSpec((b_tile, C, HWp), lambda n: (n, 0, 0)),  # x tile
                pl.BlockSpec((C, hid), full),                         # W1^T
                pl.BlockSpec((1, hid), full),                         # b1
                pl.BlockSpec((hid, C), full),                         # W2^T
                pl.BlockSpec((1, C), full),                           # b2
            ],
            out_specs=pl.BlockSpec((b_tile, C, HWp), lambda n: (n, 0, 0)),
        ),
        compiler_params=pltpu.CompilerParams(
            dimension_semantics=("parallel",),
            vmem_limit_bytes=vmem_limit),
    )(x_rows, w1t, b1, w2t, b2)

    out_rows = out_rows[:, :, :HW] if HWp != HW else out_rows
    return out_rows.reshape(N, C, H, W)


def _reference(x, p):
    """Plain-JAX reference of the PyTorch forward (avg + max pool branches)."""
    avg = jnp.mean(x, axis=(2, 3))                   # (N, C)
    mx = jnp.max(x, axis=(2, 3))                     # (N, C)

    def mlp(v):
        h = jnp.maximum(v @ p["w1"].T + p["b1"], 0.0)
        return h @ p["w2"].T + p["b2"]

    att = mlp(avg) + mlp(mx)                         # (N, C)
    scale = jax.nn.sigmoid(att)[:, :, None, None]
    return x * scale


if __name__ == "__main__":
    key = jax.random.PRNGKey(0)
    # gate_channels must be >= reduction_ratio (16) for a nonzero bottleneck.
    N, C, H, W = 2, 64, 16, 16
    reduction_ratio = 16
    hid = C // reduction_ratio                       # 4

    ks = jax.random.split(key, 5)
    x = jax.random.normal(ks[0], (N, C, H, W), jnp.float32)
    params = {
        "w1": jax.random.normal(ks[1], (hid, C), jnp.float32) / math.sqrt(C),
        "b1": 0.1 * jax.random.normal(ks[2], (hid,), jnp.float32),
        "w2": jax.random.normal(ks[3], (C, hid), jnp.float32) / math.sqrt(hid),
        "b2": 0.1 * jax.random.normal(ks[4], (C,), jnp.float32),
    }

    out = jax.block_until_ready(cbam_channel_gate_forward(x, params))
    ref = jax.block_until_ready(_reference(x, params))

    assert out.shape == (N, C, H, W)
    assert jnp.allclose(out, ref, atol=1e-4, rtol=1e-4), "mismatch vs reference"

    print("KERNEL_OK")
</pallas_src>

<mosaic_0001>
module attributes {stable_mosaic.version = 11 : i64} {
  func.func @_cbam_channel_gate_kernel(%arg0: i32, %arg1: memref<1x64x256xf32, #tpu.memory_space<vmem>>, %arg2: memref<64x4xf32, #tpu.memory_space<vmem>>, %arg3: memref<1x4xf32, #tpu.memory_space<vmem>>, %arg4: memref<4x64xf32, #tpu.memory_space<vmem>>, %arg5: memref<1x64xf32, #tpu.memory_space<vmem>>, %arg6: memref<1x64x256xf32, #tpu.memory_space<vmem>>) attributes {dimension_semantics = [#tpu.dimension_semantics<parallel>], iteration_bounds = array<i64: 2>, scalar_prefetch = 0 : i64, scratch_operands = 0 : i64, tpu.core_type = #tpu.core_type<tc>, window_params = [{transform_indices = @transform_0, window_bounds = array<i64: 1, 64, 256>}, {pipeline_mode = #tpu.pipeline_mode<synchronous>, transform_indices = @transform_1, window_bounds = array<i64: 64, 4>}, {pipeline_mode = #tpu.pipeline_mode<synchronous>, transform_indices = @transform_2, window_bounds = array<i64: 1, 4>}, {pipeline_mode = #tpu.pipeline_mode<synchronous>, transform_indices = @transform_3, window_bounds = array<i64: 4, 64>}, {pipeline_mode = #tpu.pipeline_mode<synchronous>, transform_indices = @transform_4, window_bounds = array<i64: 1, 64>}, {transform_indices = @transform_5, window_bounds = array<i64: 1, 64, 256>}]} {
    %c0 = arith.constant 0 : index
    %c0_0 = arith.constant 0 : index
    %c0_1 = arith.constant 0 : index
    %0 = vector.load %arg1[%c0, %c0_0, %c0_1] : memref<1x64x256xf32, #tpu.memory_space<vmem>>, vector<1x64x256xf32>
    %cst = arith.constant dense<0.000000e+00> : vector<1x64xf32>
    %1 = vector.multi_reduction <add>, %0, %cst [2] : vector<1x64x256xf32> to vector<1x64xf32>
    %cst_2 = arith.constant dense<0xFF800000> : vector<1x64xf32>
    %2 = vector.multi_reduction <maximumf>, %0, %cst_2 [2] : vector<1x64x256xf32> to vector<1x64xf32>
    %cst_3 = arith.constant 3.906250e-03 : f32
    %3 = vector.broadcast %cst_3 : f32 to vector<1x64xf32>
    %4 = arith.mulf %1, %3 : vector<1x64xf32>
    %5 = tpu.concatenate %4, %2 in 0 : vector<1x64xf32>, vector<1x64xf32> -> vector<2x64xf32>
    %c0_4 = arith.constant 0 : index
    %c0_5 = arith.constant 0 : index
    %6 = vector.load %arg2[%c0_4, %c0_5] : memref<64x4xf32, #tpu.memory_space<vmem>>, vector<64x4xf32>
    %cst_6 = arith.constant dense<0.000000e+00> : vector<2x4xf32>
    %7 = tpu.matmul %5, %6, %cst_6 {dimension_numbers = #tpu.dot_dimension_numbers<[1], [0], [0], [1], [0, 0, 1, 1], [], []>} : vector<2x64xf32>, vector<64x4xf32>, vector<2x4xf32> -> vector<2x4xf32>
    %c0_7 = arith.constant 0 : index
    %c0_8 = arith.constant 0 : index
    %8 = vector.load %arg3[%c0_7, %c0_8] : memref<1x4xf32, #tpu.memory_space<vmem>>, vector<1x4xf32>
    %9 = vector.broadcast %8 : vector<1x4xf32> to vector<2x4xf32>
    %10 = arith.addf %7, %9 : vector<2x4xf32>
    %cst_9 = arith.constant 0.000000e+00 : f32
    %11 = vector.broadcast %cst_9 : f32 to vector<2x4xf32>
    %12 = arith.maximumf %10, %11 : vector<2x4xf32>
    %13 = vector.extract_strided_slice %12 {offsets = [0, 0], sizes = [1, 4], strides = [1, 1]} : vector<2x4xf32> to vector<1x4xf32>
    %14 = vector.extract_strided_slice %12 {offsets = [1, 0], sizes = [1, 4], strides = [1, 1]} : vector<2x4xf32> to vector<1x4xf32>
    %15 = arith.addf %13, %14 : vector<1x4xf32>
    %c0_10 = arith.constant 0 : index
    %c0_11 = arith.constant 0 : index
    %16 = vector.load %arg4[%c0_10, %c0_11] : memref<4x64xf32, #tpu.memory_space<vmem>>, vector<4x64xf32>
    %cst_12 = arith.constant dense<0.000000e+00> : vector<1x64xf32>
    %17 = tpu.matmul %15, %16, %cst_12 {dimension_numbers = #tpu.dot_dimension_numbers<[1], [0], [0], [1], [0, 0, 1, 1], [], []>} : vector<1x4xf32>, vector<4x64xf32>, vector<1x64xf32> -> vector<1x64xf32>
    %c0_13 = arith.constant 0 : index
    %c0_14 = arith.constant 0 : index
    %18 = vector.load %arg5[%c0_13, %c0_14] : memref<1x64xf32, #tpu.memory_space<vmem>>, vector<1x64xf32>
    %cst_15 = arith.constant 2.000000e+00 : f32
    %19 = vector.broadcast %cst_15 : f32 to vector<1x64xf32>
    %20 = arith.mulf %19, %18 : vector<1x64xf32>
    %21 = arith.addf %17, %20 : vector<1x64xf32>
    %22 = arith.negf %21 : vector<1x64xf32>
    %23 = math.exp %22 : vector<1x64xf32>
    %cst_16 = arith.constant 1.000000e+00 : f32
    %24 = vector.broadcast %cst_16 : f32 to vector<1x64xf32>
    %25 = arith.addf %24, %23 : vector<1x64xf32>
    %26 = arith.divf %24, %25 : vector<1x64xf32>
    %27 = vector.shape_cast %26 : vector<1x64xf32> to vector<1x64x1xf32>
    %28 = vector.broadcast %27 : vector<1x64x1xf32> to vector<1x64x256xf32>
    %29 = arith.mulf %0, %28 : vector<1x64x256xf32>
    %c0_17 = arith.constant 0 : index
    %c0_18 = arith.constant 0 : index
    %c0_19 = arith.constant 0 : index
    %30 = vector.load %arg6[%c0_17, %c0_18, %c0_19] : memref<1x64x256xf32, #tpu.memory_space<vmem>>, vector<1x64x256xf32>
    tpu.vector_store %arg6[%c0_17, %c0_18, %c0_19], %29 {strides = array<i32>} : memref<1x64x256xf32, #tpu.memory_space<vmem>>, vector<1x64x256xf32>,
    return
  }
  func.func @transform_0(%arg0: i32) -> (i32, i32, i32) {
    %c0_i32 = arith.constant 0 : i32
    %c0_i32_0 = arith.constant 0 : i32
    %c0_i32_1 = arith.constant 0 : i32
    return %arg0, %c0_i32, %c0_i32_0 : i32, i32, i32
  }
  func.func @transform_1(%arg0: i32) -> (i32, i32) {
    %c0_i32 = arith.constant 0 : i32
    %c0_i32_0 = arith.constant 0 : i32
    %c0_i32_1 = arith.constant 0 : i32
    return %c0_i32, %c0_i32_0 : i32, i32
  }
  func.func @transform_2(%arg0: i32) -> (i32, i32) {
    %c0_i32 = arith.constant 0 : i32
    %c0_i32_0 = arith.constant 0 : i32
    %c0_i32_1 = arith.constant 0 : i32
    return %c0_i32, %c0_i32_0 : i32, i32
  }
  func.func @transform_3(%arg0: i32) -> (i32, i32) {
    %c0_i32 = arith.constant 0 : i32
    %c0_i32_0 = arith.constant 0 : i32
    %c0_i32_1 = arith.constant 0 : i32
    return %c0_i32, %c0_i32_0 : i32, i32
  }
  func.func @transform_4(%arg0: i32) -> (i32, i32) {
    %c0_i32 = arith.constant 0 : i32
    %c0_i32_0 = arith.constant 0 : i32
    %c0_i32_1 = arith.constant 0 : i32
    return %c0_i32, %c0_i32_0 : i32, i32
  }
  func.func @transform_5(%arg0: i32) -> (i32, i32, i32) {
    %c0_i32 = arith.constant 0 : i32
    %c0_i32_0 = arith.constant 0 : i32
    %c0_i32_1 = arith.constant 0 : i32
    return %arg0, %c0_i32, %c0_i32_0 : i32, i32, i32
  }
}

</mosaic_0001>

<bundles_post_ra>
// kernel: tpu_custom_call.1
= control target key start
LH: loop header
LB: loop body
LE: loop exit
PB: predicated region body
PF: predicated region fallthrough
CT: control target
= control target key end

     0   :  { %10 = vsyncpa [#allocation3], 0  ;;  %s1151_s0 = inlined_call_operand.hbm [shape: f32[2,64,256], index: 0, kind: input, shape index: {}]   ;;  %s1152_s1 = inlined_call_operand.vmem [shape: f32[64,4], index: 1, kind: input, shape index: {}]   ;;  %s1153_s2 = inlined_call_operand.vmem [shape: f32[1,4], index: 2, kind: input, shape index: {}]   ;;  %s1154_s3 = inlined_call_operand.vmem [shape: f32[4,64], index: 3, kind: input, shape index: {}]   ;;  %s1155_s4 = inlined_call_operand.vmem [shape: f32[1,64], index: 4, kind: input, shape index: {}]   ;;  %s1156_s5 = inlined_call_operand.hbm [shape: f32[2,64,256], index: 5, kind: output, shape index: {}]  }
   0x1   :  { %12 = vsyncpa [#allocation3 + $0x1], 0 }
   0x2   :  { %13 = vsyncpa [#allocation4], 0 }
   0x3   :  { %15 = vsyncpa [#allocation4 + $0x1], 0  ;;  %s860_s18 = smov 0   ;;  %s862_s19 = smov 0  }
   0x4   :  { %s864_s20 = smov 0   ;;  %s866_s21 = smov 0  }
   0x5 LB: > { %s881_s22 = sadd.s32 4294967295, %s824_s21   ;;  %s644_s23 = sadd.s32 4294967294, %s824_s21   ;;  %s824_s21 = sphi %s866_s21, %s1166_s21   ;;  %s820_s20 = sphi %s864_s20, %s1165_s20   ;;  %s816_s19 = sphi %s862_s19, %s1164_s19   ;;  %s812_s18 = sphi %s860_s18, %s1163_s18  }
   0x6   : > { %s885_s24 = sadd.s32 1, %s824_s21   ;;  %s28_s25 = sadd.s32 1, %s820_s20 }
   0x7   : > { %s25_s26 = ssub.s32 %s824_s21, %s885_s24  ;;  %p35_p0 = scmp.ne.s32.totalorder %s820_s20, %s816_s19 }
   0x8   : > { %p26_p1 = scmp.eq.s32.totalorder %s25_s26, 0  ;;  %p36_p2 = scmp.eq.s32.totalorder %s824_s21, 0 }
   0x9   : > { %p41_p3 = scmp.ne.s32.totalorder %s816_s19, %s812_s18  ;;  %p42_p4 = scmp.eq.s32.totalorder %s881_s22, 0 }
   0xa   : > { %s897_s27 = scalar_select %p26_p1, %s820_s20, %s28_s25  }
   0xb   : > { %p899_p5 = por %p36_p2, %p35_p0  ;;  %p903_p6 = por %p42_p4, %p41_p3 }
   0xc   : > { %p149_p7 = scmp.eq.s32.totalorder %s881_s22, 1  ;;  %p155_p8 = scmp.eq.s32.totalorder %s644_s23, 1 }
   0xd   : > { %p676_p10 = scmp.lt.s32.totalorder %s824_s21, 2  ;;  %s187_s7 = sand.u32 1, %s820_s20  }
   0xe   : > { %p910_p11 = por %p149_p7, %p35_p0  ;;  %p914_p12 = por %p155_p8, %p41_p3 }
   0xf   : > { %s662_s8 = sshll.u32 %s824_s21, 7  ;;  %s647_s9 = sshll.u32 %s187_s7, 7 }
  0x10   : > { %s196_s12 = scalar_lea.hbm %s1151_s0, %s662_s8  ;;  %s191_s14 = scalar_lea.vmem [#allocation2], %s647_s9 }
  0x11   : > { %s197_s13 = sshll.u32 %s196_s12, 4  ;;  %s199_s15 = sshll.u32 %s191_s14, 4  ;;  %s198_s13 = int_to_ptr.hbm [resolvable:$true] %s197_s13  ;;  %s200_s15 = int_to_ptr.vmem [resolvable:$true] %s199_s15 }
  0x12   : > { %p925_p13 = pnand %p676_p10, %p899_p5  ;;  %p650_p0 = scmp.ge.s32.totalorder %s824_s21, 1 }
  0x13   : > { %p207_p1 = scmp.lt.s32.totalorder %s824_s21, 3  ;;  %s188_s17 = scalar_lea.sflag [#allocation3], %s187_s7 }
  0x14   : > { %s728_s23 = sshra.s32 %s198_s13, 4  ;;  %p732_p3 = pneg %p925_p13  ;;  %s729_s23 = int_to_ptr.hbm [resolvable:$true] %s728_s23 }
  0x15   : > { %s730_s25 = scalar_lea.hbm %s729_s23, 128  ;;  %s735_s28 = scalar_lea.hbm %s1151_s0, 256 }
  0x16   : > { %p731_p2 = scmp.ne.s32.totalorder %s729_s23, %s730_s25  ;;  %p736_p5 = scmp.lt.s32.totalorder %s729_s23, %s1151_s0 }
  0x17   : > { %p737_p8 = scmp.lt.s32.totalorder %s735_s28, %s730_s25 }
  0x18   : > { %p733_p4 = pnand %p732_p3, %p731_p2 }
  0x19   : > { %p738_p10 = por %p737_p8, %p736_p5 }
  0x1a   : > { %p734_p7 = pneg %p733_p4 }
  0x1c   : > { %p739_p9 = pnand %p738_p10, %p734_p7 }
  0x1e   : > { %742 = shalt.err (!%p739_p9)
}
  0x1f   : > { %s826_s7 = smov 256   ;;  %s827_s11 = smov 16  }
  0x20   : > { %671 = dma.hbm_to_vmem [thread:$0]  (!%p925_p13), %s198_s13, 2048, %s200_s15, %s188_s17, %s826_s7, %s826_s7, %s827_s11  }
  0x21   : > { %p208_p2 = pnand %p650_p0, %p207_p1 }
  0x22   : > { %s946_s12 = sand.u32 (!%p208_p2), 1, %s816_s19  }
  0x23   : > { %211 = sbr.rel (%p208_p2) target bundleno = 652 (0x28c), region = 40  ;;  %s651_s14 = sshll.u32 (!%p208_p2), %s946_s12, 7 }
  0x24   : > { %s214_s23 = scalar_lea.sflag (!%p208_p2), [#allocation3], %s946_s12  ;;  %s952_s25 = scalar_lea.vmem (!%p208_p2), [#allocation2], %s651_s14 }
  0x28   : > { %803 = dma.done.wait (%p903_p6), %s214_s23, 2048  }
  0x29   : > { %805 = vsyncadd (%p903_p6), %s214_s23, 4294965248  ;;  %v959_v0 = vld [vmem:[%s952_s25 + $0x20] sm:$0xff]  ;;  %v962_v1 = vld [vmem:[%s952_s25 + $0x28] sm:$0xff]  ;;  %v325_v49 = vlaneseq  ;;  %vm330_vm0 = vcmask 130112   ;;  %vm334_vm1 = vcmask 195712   ;;  %vm338_vm2 = vcmask 261312  }
  0x2a   : > { %v965_v2 = vld [vmem:[%s952_s25] sm:$0xff]  ;;  %v267_v3 = vadd.f32 %v962_v1, %v959_v0  ;;  %v970_v4 = vld [vmem:[%s952_s25 + $0x8] sm:$0xff]  ;;  %v977_v7 = vld [vmem:[%s952_s25 + $0x30] sm:$0xff]  ;;  %v291_v18 = vmax.f32 %v959_v0, %v962_v1  ;;  %vm342_vm3 = vcmask 326912   ;;  %vm346_vm4 = vcmask 392512   ;;  %s1085_s9 = scalar_lea.vmem [#allocation5], %s651_s14 }
  0x2b   : > { %v285_v5 = vmax.f32 %v965_v2, %v970_v4  ;;  %v261_v6 = vadd.f32 %v970_v4, %v965_v2  ;;  %v980_v8 = vld [vmem:[%s952_s25 + $0x38] sm:$0xff]  ;;  %v983_v9 = vld [vmem:[%s952_s25 + $0x10] sm:$0xff]  ;;  %v995_v14 = vld [vmem:[%s952_s25 + $0x40] sm:$0xff]  ;;  %v326_v50 = vand.u32 127, %v325_v49  ;;  %vm350_vm5 = vcmask 458112   ;;  %s663_s14 = sshll.u32 %s881_s22, 7 }
  0x2c   : > { %268 = vadd.xlane.f32.xlu1 %v267_v3  ;;  %v986_v10 = vld [vmem:[%s952_s25 + $0x18] sm:$0xff]  ;;  %v270_v11 = vadd.f32 %v980_v8, %v977_v7  ;;  %v998_v15 = vld [vmem:[%s952_s25 + $0x48] sm:$0xff]  ;;  %v1001_v16 = vld [vmem:[%s952_s25 + $0x50] sm:$0xff]  ;;  %v294_v24 = vmax.f32 %v977_v7, %v980_v8  ;;  %vm354_vm6 = vcmask 523712   ;;  %vm381_vm7 = vcmask 1040384   ;;  %s567_s11 = scalar_lea.hbm %s1156_s5, %s663_s14  ;;  %s568_s23 = sshll.u32 %s1085_s9, 4  ;;  %s569_s23 = int_to_ptr.vmem [resolvable:$true] %s568_s23 }
  0x2d   : > { %286 = vmax.xlane.f32.xlu2 %v285_v5  ;;  %262 = vadd.xlane.f32.xlu0 %v261_v6  ;;  %v288_v12 = vmax.f32 %v983_v9, %v986_v10  ;;  %v264_v13 = vadd.f32 %v986_v10, %v983_v9  ;;  %v1004_v17 = vld [vmem:[%s952_s25 + $0x58] sm:$0xff]  ;;  %v273_v19 = vadd.f32 %v998_v15, %v995_v14  ;;  %v1013_v21 = vld [vmem:[%s952_s25 + $0x60] sm:$0xff]  ;;  %v1016_v22 = vld [vmem:[%s952_s25 + $0x68] sm:$0xff]  ;;  %v328_v54 = vadd.s32 4294967288, %v326_v50  ;;  %s556_s29 = scalar_lea.sflag [#allocation4], %s946_s12  ;;  %s778_s17 = scalar_lea.hbm %s1156_s5, 256 }
  0x2e   : > { %v276_v20 = vadd.f32 %v1004_v17, %v1001_v16  ;;  %v279_v23 = vadd.f32 %v1016_v22, %v1013_v21  ;;  %v297_v25 = vmax.f32 %v995_v14, %v998_v15  ;;  %v1025_v26 = vld [vmem:[%s952_s25 + $0x70] sm:$0xff]  ;;  %v1028_v27 = vld [vmem:[%s952_s25 + $0x78] sm:$0xff]  ;;  %v300_v28 = vmax.f32 %v1001_v16, %v1004_v17  ;;  %v388_v37 = vld [vmem:[%s1152_s1 + $0x28] sm:$0xff]  ;;  %s570_s25 = sshll.u32 %s567_s11, 4  ;;  %s571_s25 = int_to_ptr.hbm [resolvable:$true] %s570_s25 }
  0x2f   : > { %v282_v29 = vadd.f32 %v1028_v27, %v1025_v26  ;;  %v303_v30 = vmax.f32 %v1013_v21, %v1016_v22  ;;  %v306_v31 = vmax.f32 %v1025_v26, %v1028_v27  ;;  %v390_v32 = vld [vmem:[%s1152_s1 + $0x38] sm:$0xff]  ;;  %v389_v33 = vld [vmem:[%s1152_s1 + $0x30] sm:$0xff]  ;;  %v387_v38 = vld [vmem:[%s1152_s1 + $0x20] sm:$0xff]  ;;  %v332_v58 = vadd.s32 4294967280, %v326_v50  ;;  %s772_s22 = sshra.s32 %s571_s25, 4  ;;  %s773_s22 = int_to_ptr.hbm [resolvable:$true] %s772_s22 }
  0x30   : > { %407 = vmatpush.msra.mxu0 %v390_v32  ;;  %v386_v39 = vld [vmem:[%s1152_s1 + $0x18] sm:$0xff]  ;;  %v385_v40 = vld [vmem:[%s1152_s1 + $0x10] sm:$0xff]  ;;  %v384_v44 = vld [vmem:[%s1152_s1 + $0x8] sm:$0xff]  ;;  %v336_v61 = vadd.s32 4294967272, %v326_v50  ;;  %vm395_vm8 = vcmask 523264   ;;  %vm431_vm9 = vcmask 1043456   ;;  %p779_p0 = scmp.lt.s32.totalorder %s773_s22, %s1156_s5 }
  0x31   : > { %v383_v45 = vld [vmem:[%s1152_s1] sm:$0xff]  ;;  %vm427_vm10 = vcmask 31744   ;;  %s774_s13 = scalar_lea.hbm %s773_s22, 128 }
  0x32   : > { %408 = vmatpush.msra.mxu0 %v389_v33  ;;  %p775_p6 = scmp.ne.s32.totalorder %s773_s22, %s774_s13  ;;  %p780_p1 = scmp.lt.s32.totalorder %s778_s17, %s774_s13 }
  0x34   : > { %271 = vadd.xlane.f32.xlu1 %v270_v11  ;;  %409 = vmatpush.msra.mxu0 %v388_v37  ;;  %v340_v11 = vadd.s32 4294967264, %v326_v50  ;;  %v352_v37 = vadd.s32 4294967240, %v326_v50  ;;  %p776_p9 = pnand %p775_p6, %p910_p11  ;;  %p781_p3 = por %p780_p1, %p779_p0 }
  0x35   : > { %289 = vmax.xlane.f32.xlu2 %v288_v12  ;;  %265 = vadd.xlane.f32.xlu0 %v264_v13 }
  0x36   : > { %410 = vmatpush.msra.mxu0 %v387_v38  ;;  %p777_p13 = pneg %p776_p9 }
  0x38   : > { %411 = vmatpush.msra.mxu0 %v386_v39  ;;  %p782_p4 = pnand %p781_p3, %p777_p13 }
  0x3a   : > { %412 = vmatpush.msra.mxu0 %v385_v40 }
  0x3c   : > { %292 = vmax.xlane.f32.xlu1 %v291_v18  ;;  %413 = vmatpush.msra.mxu0 %v384_v44 }
  0x3d   : > { %274 = vadd.xlane.f32.xlu0 %v273_v19  ;;  %277 = vadd.xlane.f32.xlu2 %v276_v20  ;;  %v344_v19 = vadd.s32 4294967256, %v326_v50  ;;  %v348_v20 = vadd.s32 4294967248, %v326_v50 }
  0x3e   : > { %414 = vmatpush.msra.mxu0 %v383_v45 }
  0x44   : > { %280 = vadd.xlane.f32.xlu1 %v279_v23 }
  0x45   : > { %295 = vmax.xlane.f32.xlu0 %v294_v24  ;;  %298 = vmax.xlane.f32.xlu2 %v297_v25 }
  0x4c   : > { %301 = vmax.xlane.f32.xlu1 %v300_v28 }
  0x4d   : > { %283 = vadd.xlane.f32.xlu0 %v282_v29  ;;  %304 = vmax.xlane.f32.xlu2 %v303_v30 }
  0x55   : > { %307 = vmax.xlane.f32.xlu0 %v306_v31 }
  0x9f   : > { %v269_v34 = vpop.xlane.xlu1 %268 }
  0xa0   : > { %v287_v35 = vpop.xlane.xlu2 %286  ;;  %v263_v36 = vpop.xlane.xlu0 %262  ;;  %v311_v59 = vmul.f32 0.00390625, %v269_v34 }
  0xa1   : > { %v309_v53 = vmul.f32 0.00390625, %v263_v36  ;;  %v365_v62 = vperm.slane %v287_v35, %v326_v50 }
  0xa2   : > { %v333_v13 = vperm.slane %v311_v59, %v332_v58 }
  0xa3   : > { %v327_v60 = vperm.slane %v309_v53, %v326_v50 }
  0xa7   : > { %v272_v41 = vpop.xlane.xlu1 %271 }
  0xa8   : > { %v290_v42 = vpop.xlane.xlu2 %289  ;;  %v266_v43 = vpop.xlane.xlu0 %265  ;;  %v312_v63 = vmul.f32 0.00390625, %v272_v41 }
  0xa9   : > { %v310_v51 = vmul.f32 0.00390625, %v266_v43  ;;  %v366_v3 = vperm.slane %v290_v42, %v328_v54 }
  0xaa   : > { %v337_v25 = vperm.slane %v312_v63, %v336_v61 }
  0xab   : > { %v329_v57 = vperm.slane %v310_v51, %v328_v54  ;;  %v367_v28 = vsel %vm330_vm0, %v366_v3, %v365_v62  ;;  %v476_v3 = vshrl.u32 %v325_v49, 7 }
  0xad   : > { %v331_v5 = vsel %vm330_vm0, %v329_v57, %v327_v60  ;;  %v424_v57 = vld [vmem:[%s1154_s3] sm:$0xf]  ;;  %714 = vset.pattern.permute.xlu1 %v476_v3 }
  0xae   : > { %v335_v29 = vsel %vm334_vm1, %v333_v13, %v331_v5  ;;  %654 = vmatpush.msk.msra.mxu1 %vm431_vm9, %v424_v57  ;;  %v489_v5 = vadd.s32 16, %v476_v3 }
  0xaf   : > { %v293_v46 = vpop.xlane.xlu1 %292  ;;  %v339_v40 = vsel %vm338_vm2, %v337_v25, %v335_v29 }
  0xb0   : > { %v275_v47 = vpop.xlane.xlu0 %274  ;;  %v278_v48 = vpop.xlane.xlu2 %277  ;;  %v368_v6 = vperm.slane %v293_v46, %v332_v58  ;;  %v723_v58 = vld [vmem:[%s1153_s2] ss:$0 sm:$0xff]  ;;  %716 = vset.pattern.permute.xlu0 %v489_v5 }
  0xb1   : > { %v313_v12 = vmul.f32 0.00390625, %v275_v47  ;;  %v314_v30 = vmul.f32 0.00390625, %v278_v48 }
  0xb2   : > { %v369_v31 = vsel %vm334_vm1, %v368_v6, %v367_v28  ;;  %v483_v6 = vadd.s32 8, %v476_v3 }
  0xb3   : > { %v341_v32 = vperm.slane %v313_v12, %v340_v11  ;;  %v345_v41 = vperm.slane %v314_v30, %v344_v19 }
  0xb4   : > { %715 = vset.pattern.permute.xlu2 %v483_v6 }
  0xb5   : > { %v343_v42 = vsel %vm342_vm3, %v341_v32, %v339_v40  ;;  %v513_v40 = vadd.s32 48, %v476_v3 }
  0xb6   : > { %v347_v51 = vsel %vm346_vm4, %v345_v41, %v343_v42 }
  0xb7   : > { %v281_v52 = vpop.xlane.xlu1 %280 }
  0xb8   : > { %v296_v55 = vpop.xlane.xlu0 %295  ;;  %v299_v56 = vpop.xlane.xlu2 %298  ;;  %v315_v33 = vmul.f32 0.00390625, %v281_v52 }
  0xb9   : > { %v370_v18 = vperm.slane %v296_v55, %v336_v61  ;;  %v372_v34 = vperm.slane %v299_v56, %v340_v11  ;;  %v425_v11 = vld [vmem:[%s1155_s4] sm:$0x1] }
  0xba   : > { %v349_v43 = vperm.slane %v315_v33, %v348_v20  ;;  %v426_v12 = vmul.f32 2.0, %v425_v11 }
  0xbb   : > { %v371_v35 = vsel %vm338_vm2, %v370_v18, %v369_v31 }
  0xbc   : > { %v373_v44 = vsel %vm342_vm3, %v372_v34, %v371_v35  ;;  %v351_v53 = vsel %vm350_vm5, %v349_v43, %v347_v51 }
  0xbf   : > { %v302_v23 = vpop.xlane.xlu1 %301 }
  0xc0   : > { %v284_v24 = vpop.xlane.xlu0 %283  ;;  %v374_v36 = vperm.slane %v302_v23, %v344_v19  ;;  %v305_v39 = vpop.xlane.xlu2 %304 }
  0xc1   : > { %v316_v38 = vmul.f32 0.00390625, %v284_v24  ;;  %v376_v45 = vperm.slane %v305_v39, %v348_v20  ;;  %v507_v39 = vadd.s32 40, %v476_v3 }
  0xc2   : > { %v375_v46 = vsel %vm346_vm4, %v374_v36, %v373_v44  ;;  %v495_v36 = vadd.s32 24, %v476_v3 }
  0xc3   : > { %v353_v47 = vperm.slane %v316_v38, %v352_v37  ;;  %v377_v50 = vsel %vm350_vm5, %v376_v45, %v375_v46  ;;  %v519_v38 = vadd.s32 56, %v476_v3 }
  0xc5   : > { %v355_v54 = vsel %vm354_vm6, %v353_v47, %v351_v53 }
  0xc8   : > { %v308_v48 = vpop.xlane.xlu0 %307 }
  0xc9   : > { %v378_v52 = vperm.slane %v308_v48, %v352_v37  ;;  %v501_v37 = vadd.s32 32, %v476_v3 }
  0xcb   : > { %v379_v55 = vsel %vm354_vm6, %v378_v52, %v377_v50 }
  0xcc   : > { %v382_v56 = vsel %vm381_vm7, %v355_v54, %v379_v55 }
  0xcd   : > { %653 = vmatmul.msk.f32.vlgmr.msra.gmra.mxu0 %vm395_vm8, %v382_v56 }
 0x14a   : > { %v416_v59 = vpop.f32.mrf.mxu0 }
 0x14b   : > { %v417_v60 = vadd.f32 %v723_v58, %v416_v59 }
 0x14d   : > { %v419_v61 = vmax.f32 %v417_v60, 0.0 }
 0x14f   : > { %v421_v62 = vrot.slane %v419_v61, 1 }
 0x151   : > { %v423_v63 = vadd.f32 %v421_v62, %v419_v61 }
 0x153   : > { %655 = vmatmul.msk.f32.vlgmr.msra.gmra.mxu1 %vm427_vm10, %v423_v63 }
 0x1d0   : > { %v452_v13 = vpop.f32.mrf.mxu1 }
 0x1d1   : > { %v453_v18 = vadd.f32 %v452_v13, %v426_v12 }
 0x1d3   : > { %v656_v19 = vmul.f32 -1.442695, %v453_v18 }
 0x1d5   : > { %724 = vpow2.f32 %v656_v19 }
 0x1db   : > { %v725_v20 = vpop.eup %724 }
 0x1dc   : > { %v458_v23 = vadd.f32 1.0, %v725_v20 }
 0x1de   : > { %726 = vrcp.f32 %v458_v23  ;;  %v470_v28 = vand.u32 2147483648, %v458_v23  ;;  %v468_v30 = vand.u32 2147483647, %v458_v23  ;;  %vm464_vm12 = vweird.f32 %v458_v23 }
 0x1e0   : > { %v471_v32 = vor.u32 1.1754944e-38, %v470_v28  ;;  %vm469_vm14 = vcmp.eq.f32.partialorder %v468_v30, 8.507059e+37 }
 0x1e4   : > { %v727_v24 = vpop.eup %726 }
 0x1e5   : > { %v460_v25 = vmul.f32 %v727_v24, %v458_v23  ;;  %vm465_vm11 = vweird.f32 %v727_v24 }
 0x1e6   : > { %vm466_vm13 = vmor %vm464_vm12, %vm465_vm11 }
 0x1e7   : > { %v461_v49 = vsub.f32 1.0, %v460_v25 }
 0x1e9   : > { %v462_v29 = vmul.f32 %v727_v24, %v461_v49 }
 0x1eb   : > { %v463_v31 = vadd.f32 %v727_v24, %v462_v29 }
 0x1ed   : > { %v467_v33 = vsel %vm466_vm13, %v727_v24, %v463_v31 }
 0x1ee   : > { %v472_v34 = vsel %vm469_vm14, %v471_v32, %v467_v33 }
 0x1ef   : > { %v474_v35 = vperm.slane %v472_v34, 0 }
 0x1f1   : > { %491 = vperm.xlu0 %716, %v474_v35   ;;  %485 = vperm.xlu2 %715, %v474_v35  }
 0x1f2   : > { %479 = vperm.xlu1 %714, %v474_v35  }
 0x1f9   : > { %717 = vset.pattern.permute.xlu2 %v495_v36  ;;  %722 = vset.pattern.permute.xlu0 %v519_v38 }
 0x1fa   : > { %718 = vset.pattern.permute.xlu1 %v501_v37 }
 0x201   : > { %497 = vperm.xlu2 %717, %v474_v35  }
 0x202   : > { %503 = vperm.xlu1 %718, %v474_v35  }
 0x209   : > { %719 = vset.pattern.permute.xlu2 %v507_v39 }
 0x20a   : > { %720 = vset.pattern.permute.xlu1 %v513_v40 }
 0x211   : > { %509 = vperm.xlu2 %719, %v474_v35  }
 0x212   : > { %515 = vperm.xlu1 %720, %v474_v35  }
 0x219   : > { %721 = vset.pattern.permute.xlu2 %v519_v38 }
 0x221   : > { %521 = vperm.xlu2 %721, %v474_v35  }
 0x24b   : > { %v486_v41 = vpop.permute.xlu2 %485 }
 0x24c   : > { %v525_v42 = vmul.f32 %v486_v41, %v983_v9  ;;  %v526_v43 = vmul.f32 %v486_v41, %v986_v10 }
 0x24e   : > { %541 = vst [vmem:[%s1085_s9 + $0x10] sm:$0xff] %v525_v42 }
 0x24f   : > { %542 = vst [vmem:[%s1085_s9 + $0x18] sm:$0xff] %v526_v43 }
 0x25b   : > { %v498_v44 = vpop.permute.xlu2 %497 }
 0x25c   : > { %v529_v45 = vmul.f32 %v498_v44, %v977_v7  ;;  %v530_v9 = vmul.f32 %v498_v44, %v980_v8 }
 0x25e   : > { %545 = vst [vmem:[%s1085_s9 + $0x30] sm:$0xff] %v529_v45 }
 0x25f   : > { %546 = vst [vmem:[%s1085_s9 + $0x38] sm:$0xff] %v530_v9 }
 0x263   : > { %v492_v10 = vpop.permute.xlu0 %491 }
 0x264   : > { %v527_v46 = vmul.f32 %v492_v10, %v959_v0  ;;  %v528_v47 = vmul.f32 %v492_v10, %v962_v1  ;;  %v480_v48 = vpop.permute.xlu1 %479 }
 0x265   : > { %v523_v51 = vmul.f32 %v480_v48, %v965_v2  ;;  %v524_v52 = vmul.f32 %v480_v48, %v970_v4 }
 0x266   : > { %543 = vst [vmem:[%s1085_s9 + $0x20] sm:$0xff] %v527_v46 }
 0x267   : > { %544 = vst [vmem:[%s1085_s9 + $0x28] sm:$0xff] %v528_v47 }
 0x268   : > { %539 = vst [vmem:[%s1085_s9] sm:$0xff] %v523_v51 }
 0x269   : > { %540 = vst [vmem:[%s1085_s9 + $0x8] sm:$0xff] %v524_v52 }
 0x26b   : > { %v510_v7 = vpop.permute.xlu2 %509 }
 0x26c   : > { %v533_v8 = vmul.f32 %v510_v7, %v1001_v16  ;;  %v534_v0 = vmul.f32 %v510_v7, %v1004_v17 }
 0x26e   : > { %549 = vst [vmem:[%s1085_s9 + $0x50] sm:$0xff] %v533_v8 }
 0x26f   : > { %550 = vst [vmem:[%s1085_s9 + $0x58] sm:$0xff] %v534_v0 }
 0x274   : > { %v504_v1 = vpop.permute.xlu1 %503 }
 0x275   : > { %v531_v2 = vmul.f32 %v504_v1, %v995_v14  ;;  %v532_v4 = vmul.f32 %v504_v1, %v998_v15 }
 0x277   : > { %547 = vst [vmem:[%s1085_s9 + $0x40] sm:$0xff] %v531_v2 }
 0x278   : > { %548 = vst [vmem:[%s1085_s9 + $0x48] sm:$0xff] %v532_v4 }
 0x27b   : > { %v522_v50 = vpop.permute.xlu2 %521 }
 0x27c   : > { %v537_v53 = vmul.f32 %v522_v50, %v1025_v26  ;;  %v538_v16 = vmul.f32 %v522_v50, %v1028_v27 }
 0x27e   : > { %553 = vst [vmem:[%s1085_s9 + $0x70] sm:$0xff] %v537_v53 }
 0x27f   : > { %554 = vst [vmem:[%s1085_s9 + $0x78] sm:$0xff] %v538_v16 }
 0x284   : > { %v516_v14 = vpop.permute.xlu1 %515 }
 0x285   : > { %v535_v15 = vmul.f32 %v516_v14, %v1013_v21  ;;  %v536_v17 = vmul.f32 %v516_v14, %v1016_v22 }
 0x287   : > { %551 = vst [vmem:[%s1085_s9 + $0x60] sm:$0xff] %v535_v15 }
 0x288   : > { %552 = vst [vmem:[%s1085_s9 + $0x68] sm:$0xff] %v536_v17 }
 0x289   : > { %785 = shalt.err (!%p782_p4)
}
 0x28a   : > { %s828_s12 = smov 256   ;;  %s829_s28 = smov 16  }
 0x28b   : > { %666 = dma.vmem_to_hbm [thread:$0]  (%p910_p11), %s569_s23, 2048, %s571_s25, %s556_s29, %s828_s12, %s828_s12, %s829_s28  }
 0x28c PF: > { %s585_s9 = sand.u32 1, %s812_s18   ;;  %p1162_p7 = scmp.ge.s32.totalorder %s824_s21, 2 }
 0x28d   : > { %s586_s14 = scalar_lea.sflag [#allocation4], %s585_s9 }
 0x28e   : > { %p673_p5 = pnand %p1162_p7, %p914_p12 }
 0x290   : > { %p674_p8 = pneg %p673_p5 }
 0x292   : > { %807 = dma.done.wait (%p674_p8), %s586_s14, 2048  }
 0x293   : > { %809 = vsyncadd (%p674_p8), %s586_s14, 4294965248  ;;  %p18_p10 = scmp.ge.s32.totalorder %s885_s24, 4   ;;  %s1163_s18 = smov %s816_s19 }
 0x294   : > { %s1164_s19 = smov %s820_s20  ;;  %s1165_s20 = smov %s897_s27 }
 0x295   : > { %s1166_s21 = smov %s885_s24  ;;  %20 = sbr.rel (!%p18_p10) target bundleno = 5 (0x5), region = 85 }
 0x29a   :  { %592 = vsyncpa [#allocation3], 1 }
 0x29b   :  { %594 = vsyncpa [#allocation3 + $0x1], 1 }
 0x29c   :  { %595 = vsyncpa [#allocation4], 1 }
 0x29d   :  { %597 = vsyncpa [#allocation4 + $0x1], 1 }

</bundles_post_ra>
